<compile_context>
chip_gen: v5e
topology: v5e:2x2
jax: 0.10.0
libtpu: 0.0.40
codegen_flags: <defaults>
</compile_context>

<pallas_src>
import jax
import jax.numpy as jnp
from jax.experimental import pallas as pl
from jax.experimental.pallas import tpu as pltpu

BN_EPS = 1e-5  # PyTorch BatchNorm2d default


def _start_block_kernel(patches_ref, w_ref, gamma_ref, beta_ref, o_ref):
    """Fused conv (as one K=27 matmul) + batch-norm (batch stats) + ReLU.

    patches_ref: (KH*KW*Cin, N*H*W)  bf16  im2col'ed input (lane-dense)
    w_ref:       (tc, KH*KW*Cin)     bf16  channel tile of the folded weight
    gamma_ref:   (tc, 1)             f32   BN scale (channel tile)
    beta_ref:    (tc, 1)             f32   BN shift (channel tile)
    o_ref:       (tc, N*H*W)         f32   output tile (lane-dense)
    """
    # --- convolution: single MXU contraction, bf16 operands, f32 accumulate ---
    acc = jnp.dot(w_ref[...], patches_ref[...],
                  preferred_element_type=jnp.float32)            # (tc, NHW) f32

    # --- one-pass batch norm (training-mode stats over the full N*H*W axis) ---
    inv_count = 1.0 / float(acc.shape[1])
    mean = jnp.sum(acc, axis=1, keepdims=True) * inv_count       # (tc, 1)
    ex2 = jnp.sum(acc * acc, axis=1, keepdims=True) * inv_count  # (tc, 1)
    var = jnp.maximum(ex2 - mean * mean, 0.0)                    # biased variance
    inv_std = jax.lax.rsqrt(var + BN_EPS)
    scale = gamma_ref[...] * inv_std                             # (tc, 1)
    shift = beta_ref[...] - mean * scale                         # (tc, 1)

    # --- fused scale/shift + ReLU, full-lane-width store ---
    o_ref[...] = jnp.maximum(acc * scale + shift, 0.0).astype(o_ref.dtype)


def start_block_forward(x_nchw, conv_w, gamma, beta):
    """x_nchw: (N, 3, H, W) f32. conv_w: (Cout, 3, KH, KW). Returns (N, Cout, H, W)."""
    N, Cin, H, W = x_nchw.shape
    Cout, _, KH, KW = conv_w.shape
    pad = 1  # module uses padding=1
    NHW = N * H * W
    Kdim = KH * KW * Cin

    # ---- wrapper plumbing: zero-pad + im2col into a lane-dense (Kdim, NHW) slab ----
    x_cnhw = jnp.transpose(x_nchw, (1, 0, 2, 3))                        # (Cin, N, H, W)
    x_pad = jnp.pad(x_cnhw, ((0, 0), (0, 0), (pad, pad), (pad, pad)))   # (Cin, N, Hp, Wp)
    taps = [x_pad[:, :, kh:kh + H, kw:kw + W]                           # (Cin, N, H, W)
            for kh in range(KH) for kw in range(KW)]
    patches = jnp.stack(taps, axis=0).reshape(Kdim, NHW)                # (27, NHW)
    patches = patches.astype(jnp.bfloat16)

    # weight -> (Cout, KH*KW*Cin), tap-major then cin, matching `patches` ordering
    w2d = jnp.transpose(conv_w, (0, 2, 3, 1)).reshape(Cout, Kdim).astype(jnp.bfloat16)

    gamma2d = gamma.reshape(Cout, 1).astype(jnp.float32)
    beta2d = beta.reshape(Cout, 1).astype(jnp.float32)

    # channel tile: grid axis is "parallel" (megacore) and BN-safe (per-channel stats)
    tc = 8 if Cout % 8 == 0 else Cout
    grid = (Cout // tc,)

    out_flat = pl.pallas_call(
        _start_block_kernel,
        out_shape=jax.ShapeDtypeStruct((Cout, NHW), jnp.float32),
        grid=grid,
        in_specs=[
            pl.BlockSpec((Kdim, NHW), lambda i: (0, 0)),   # patches (shared by all tiles)
            pl.BlockSpec((tc, Kdim), lambda i: (i, 0)),    # folded weight tile
            pl.BlockSpec((tc, 1), lambda i: (i, 0)),       # gamma tile
            pl.BlockSpec((tc, 1), lambda i: (i, 0)),       # beta tile
        ],
        out_specs=pl.BlockSpec((tc, NHW), lambda i: (i, 0)),
        compiler_params=pltpu.CompilerParams(
            dimension_semantics=("parallel",),
        ),
    )(patches, w2d, gamma2d, beta2d)

    # back to the module's NCHW convention (wrapper plumbing)
    return jnp.transpose(out_flat.reshape(Cout, N, H, W), (1, 0, 2, 3))


def _reference(x_nchw, conv_w, gamma, beta):
    """Pure-JAX f32 reference (same semantics as the PyTorch module)."""
    out = jax.lax.conv_general_dilated(
        x_nchw, conv_w, window_strides=(1, 1), padding=((1, 1), (1, 1)),
        dimension_numbers=("NCHW", "OIHW", "NCHW"),
    )
    mean = jnp.mean(out, axis=(0, 2, 3), keepdims=True)
    var = jnp.mean((out - mean) ** 2, axis=(0, 2, 3), keepdims=True)  # biased
    normed = (out - mean) * jax.lax.rsqrt(var + BN_EPS)
    normed = normed * gamma.reshape(1, -1, 1, 1) + beta.reshape(1, -1, 1, 1)
    return jnp.maximum(normed, 0.0)


if __name__ == "__main__":
    # StartBlock(out_planes=16, kernel_size=3); input is NCHW with 3 channels.
    N, Cin, H, W = 2, 3, 16, 16
    Cout, K = 16, 3

    key = jax.random.PRNGKey(0)
    kx, kw, kg, kb = jax.random.split(key, 4)
    x = jax.random.normal(kx, (N, Cin, H, W), dtype=jnp.float32)
    conv_w = jax.random.normal(kw, (Cout, Cin, K, K), dtype=jnp.float32) * 0.1
    gamma = 1.0 + 0.1 * jax.random.normal(kg, (Cout,), dtype=jnp.float32)
    beta = 0.1 * jax.random.normal(kb, (Cout,), dtype=jnp.float32)

    out = start_block_forward(x, conv_w, gamma, beta)
    out = jax.block_until_ready(out)

    ref = _reference(x, conv_w, gamma, beta)
    assert out.shape == (N, Cout, H, W)
    # tolerance slightly loosened vs f32 reference because conv operands are bf16
    assert jnp.allclose(out, ref, rtol=2e-2, atol=2e-2), "mismatch vs reference"

    print("KERNEL_OK")
</pallas_src>

<mosaic_0001>
module attributes {stable_mosaic.version = 11 : i64} {
  func.func @_start_block_kernel(%arg0: i32, %arg1: memref<27x512xbf16, #tpu.memory_space<vmem>>, %arg2: memref<8x27xbf16, #tpu.memory_space<vmem>>, %arg3: memref<8x1xf32, #tpu.memory_space<vmem>>, %arg4: memref<8x1xf32, #tpu.memory_space<vmem>>, %arg5: memref<8x512xf32, #tpu.memory_space<vmem>>) attributes {dimension_semantics = [#tpu.dimension_semantics<parallel>], iteration_bounds = array<i64: 2>, scalar_prefetch = 0 : i64, scratch_operands = 0 : i64, tpu.core_type = #tpu.core_type<tc>, window_params = [{pipeline_mode = #tpu.pipeline_mode<synchronous>, transform_indices = @transform_0, window_bounds = array<i64: 27, 512>}, {transform_indices = @transform_1, window_bounds = array<i64: 8, 27>}, {transform_indices = @transform_2, window_bounds = array<i64: 8, 1>}, {transform_indices = @transform_3, window_bounds = array<i64: 8, 1>}, {transform_indices = @transform_4, window_bounds = array<i64: 8, 512>}]} {
    %c0 = arith.constant 0 : index
    %c0_0 = arith.constant 0 : index
    %0 = vector.load %arg2[%c0, %c0_0] : memref<8x27xbf16, #tpu.memory_space<vmem>>, vector<8x27xbf16>
    %c0_1 = arith.constant 0 : index
    %c0_2 = arith.constant 0 : index
    %1 = vector.load %arg1[%c0_1, %c0_2] : memref<27x512xbf16, #tpu.memory_space<vmem>>, vector<27x512xbf16>
    %cst = arith.constant dense<0.000000e+00> : vector<8x512xf32>
    %2 = tpu.matmul %0, %1, %cst {dimension_numbers = #tpu.dot_dimension_numbers<[1], [0], [0], [1], [0, 0, 1, 1], [], []>} : vector<8x27xbf16>, vector<27x512xbf16>, vector<8x512xf32> -> vector<8x512xf32>
    %cst_3 = arith.constant dense<0.000000e+00> : vector<8xf32>
    %3 = vector.multi_reduction <add>, %2, %cst_3 [1] : vector<8x512xf32> to vector<8xf32>
    %4 = vector.shape_cast %3 : vector<8xf32> to vector<8x1xf32>
    %cst_4 = arith.constant 0.001953125 : f32
    %5 = vector.broadcast %cst_4 : f32 to vector<8x1xf32>
    %6 = arith.mulf %4, %5 : vector<8x1xf32>
    %7 = arith.mulf %2, %2 : vector<8x512xf32>
    %cst_5 = arith.constant dense<0.000000e+00> : vector<8xf32>
    %8 = vector.multi_reduction <add>, %7, %cst_5 [1] : vector<8x512xf32> to vector<8xf32>
    %9 = vector.shape_cast %8 : vector<8xf32> to vector<8x1xf32>
    %cst_6 = arith.constant 0.001953125 : f32
    %10 = vector.broadcast %cst_6 : f32 to vector<8x1xf32>
    %11 = arith.mulf %9, %10 : vector<8x1xf32>
    %12 = arith.mulf %6, %6 : vector<8x1xf32>
    %13 = arith.subf %11, %12 : vector<8x1xf32>
    %cst_7 = arith.constant 0.000000e+00 : f32
    %14 = vector.broadcast %cst_7 : f32 to vector<8x1xf32>
    %15 = arith.maximumf %13, %14 : vector<8x1xf32>
    %cst_8 = arith.constant 9.99999974E-6 : f32
    %16 = vector.broadcast %cst_8 : f32 to vector<8x1xf32>
    %17 = arith.addf %15, %16 : vector<8x1xf32>
    %18 = math.rsqrt %17 : vector<8x1xf32>
    %c0_9 = arith.constant 0 : index
    %c0_10 = arith.constant 0 : index
    %19 = vector.load %arg3[%c0_9, %c0_10] : memref<8x1xf32, #tpu.memory_space<vmem>>, vector<8x1xf32>
    %20 = arith.mulf %19, %18 : vector<8x1xf32>
    %c0_11 = arith.constant 0 : index
    %c0_12 = arith.constant 0 : index
    %21 = vector.load %arg4[%c0_11, %c0_12] : memref<8x1xf32, #tpu.memory_space<vmem>>, vector<8x1xf32>
    %22 = arith.mulf %6, %20 : vector<8x1xf32>
    %23 = arith.subf %21, %22 : vector<8x1xf32>
    %24 = vector.broadcast %20 : vector<8x1xf32> to vector<8x512xf32>
    %25 = arith.mulf %2, %24 : vector<8x512xf32>
    %26 = vector.broadcast %23 : vector<8x1xf32> to vector<8x512xf32>
    %27 = arith.addf %25, %26 : vector<8x512xf32>
    %cst_13 = arith.constant 0.000000e+00 : f32
    %28 = vector.broadcast %cst_13 : f32 to vector<8x512xf32>
    %29 = arith.maximumf %27, %28 : vector<8x512xf32>
    %c0_14 = arith.constant 0 : index
    %c0_15 = arith.constant 0 : index
    %30 = vector.load %arg5[%c0_14, %c0_15] : memref<8x512xf32, #tpu.memory_space<vmem>>, vector<8x512xf32>
    tpu.vector_store %arg5[%c0_14, %c0_15], %29 {strides = array<i32>} : memref<8x512xf32, #tpu.memory_space<vmem>>, vector<8x512xf32>,
    return
  }
  func.func @transform_0(%arg0: i32) -> (i32, i32) {
    %c0_i32 = arith.constant 0 : i32
    %c0_i32_0 = arith.constant 0 : i32
    %c0_i32_1 = arith.constant 0 : i32
    return %c0_i32, %c0_i32_0 : i32, i32
  }
  func.func @transform_1(%arg0: i32) -> (i32, i32) {
    %c0_i32 = arith.constant 0 : i32
    %c0_i32_0 = arith.constant 0 : i32
    return %arg0, %c0_i32 : i32, i32
  }
  func.func @transform_2(%arg0: i32) -> (i32, i32) {
    %c0_i32 = arith.constant 0 : i32
    %c0_i32_0 = arith.constant 0 : i32
    return %arg0, %c0_i32 : i32, i32
  }
  func.func @transform_3(%arg0: i32) -> (i32, i32) {
    %c0_i32 = arith.constant 0 : i32
    %c0_i32_0 = arith.constant 0 : i32
    return %arg0, %c0_i32 : i32, i32
  }
  func.func @transform_4(%arg0: i32) -> (i32, i32) {
    %c0_i32 = arith.constant 0 : i32
    %c0_i32_0 = arith.constant 0 : i32
    return %arg0, %c0_i32 : i32, i32
  }
}

</mosaic_0001>

<bundles_post_ra>
// kernel: tpu_custom_call.1
= control target key start
LH: loop header
LB: loop body
LE: loop exit
PB: predicated region body
PF: predicated region fallthrough
CT: control target
= control target key end

     0   :  { %9 = vsyncpa [#allocation3], 0  ;;  %s888_s0 = inlined_call_operand.hbm [shape: bf16[27,512], index: 0, kind: input, shape index: {}]   ;;  %s889_s1 = inlined_call_operand.vmem [shape: bf16[16,27], index: 1, kind: input, shape index: {}]   ;;  %s890_s2 = inlined_call_operand.vmem [shape: f32[16,1], index: 2, kind: input, shape index: {}]   ;;  %s891_s3 = inlined_call_operand.vmem [shape: f32[16,1], index: 3, kind: input, shape index: {}]   ;;  %s892_s4 = inlined_call_operand.hbm [shape: f32[16,512], index: 4, kind: output, shape index: {}]  }
   0x1   :  { %10 = vsyncpa [#allocation4], 0 }
   0x2   :  { %12 = vsyncpa [#allocation4 + $0x1], 0  ;;  %s781_s15 = smov 0   ;;  %s783_s16 = smov 0  }
   0x3   :  { %s785_s17 = smov 0   ;;  %s787_s18 = smov 0  }
   0x4 LB: > { %s802_s19 = sadd.s32 4294967295, %s749_s18   ;;  %s535_s20 = sadd.s32 4294967294, %s749_s18   ;;  %s749_s18 = sphi %s787_s18, %s898_s18   ;;  %s745_s17 = sphi %s785_s17, %s897_s17   ;;  %s741_s16 = sphi %s783_s16, %s896_s16   ;;  %s737_s15 = sphi %s781_s15, %s895_s15  }
   0x5   : > { %s806_s21 = sadd.s32 1, %s749_s18   ;;  %s124_s22 = sadd.s32 1, %s745_s17 }
   0x6   : > { %s121_s23 = ssub.s32 %s749_s18, %s806_s21  ;;  %p134_p0 = scmp.ne.s32.totalorder %s745_s17, %s741_s16 }
   0x7   : > { %p122_p1 = scmp.eq.s32.totalorder %s121_s23, 0  ;;  %p135_p2 = scmp.eq.s32.totalorder %s802_s19, 1 }
   0x8   : > { %p140_p3 = scmp.ne.s32.totalorder %s741_s16, %s737_s15  ;;  %p141_p4 = scmp.eq.s32.totalorder %s535_s20, 1 }
   0x9   : > { %s817_s24 = scalar_select %p122_p1, %s745_s17, %s124_s22  }
   0xa   : > { %p819_p5 = por %p135_p2, %p134_p0  ;;  %p823_p6 = por %p141_p4, %p140_p3 }
   0xb   : > { %p536_p7 = scmp.ge.s32.totalorder %s749_s18, 1  ;;  %p148_p8 = scmp.lt.s32.totalorder %s749_s18, 3 }
   0xc   : > { %p609_p9 = scmp.eq.s32.totalorder %s802_s19, 0  ;;  %s159_s29 = sshll.u32 %s888_s0, 4  ;;  %s160_s29 = int_to_ptr.hbm [resolvable:$true] %s159_s29 }
   0xd   : > { %p149_p10 = pnand %p536_p7, %p148_p8  ;;  %s751_s30 = smov [#allocation2]  }
   0xe   : > { %s161_s5 = sshll.u32 %s751_s30, 4  ;;  %s752_s6 = smov 256   ;;  %s162_s5 = int_to_ptr.vmem [resolvable:$true] %s161_s5 }
   0xf   : > { %p601_p11 = pneg %p149_p10  ;;  %s753_s7 = smov 16  }
  0x10   : > { %198 = sbr.rel (%p149_p10) target bundleno = 458 (0x1ca), region = 36 }
  0x11   : > { %p602_p12 = pnand %p609_p9, %p601_p11 }
  0x13   : > { %604 = dma.hbm_to_vmem [thread:$0]  (!%p602_p12), %s160_s29, 1024, %s162_s5, [#allocation3], %s752_s6, %s752_s6, %s753_s7  }
  0x15   : > { %728 = dma.done.wait (%p609_p9), [#allocation3], 1024  }
  0x16   : > { %730 = vsyncadd (%p609_p9), [#allocation3], 4294966272  ;;  %vm294_vm0 = vcmask 1044480   ;;  %p232_p13 = scmp.lt.s32.totalorder %s802_s19, 1  ;;  %vm295_vm1 = vcmask 1045504   ;;  %v754_v0 = vmov 65535  }
  0x17   : > { %v296_v1 = vsel %vm294_vm0, 4294967295, %v754_v0  ;;  %v563_v3 = vld [vmem:[#allocation2 + $0x20] sm:$0xf]  ;;  %v592_v4 = vld [vmem:[#allocation2 + $0x2c] sm:$0x30]  ;;  %vm290_vm2 = vcmask 220160  }
  0x18   : > { %s841_s8 = scalar_select %p232_p13, %s802_s19, 1  ;;  %v297_v2 = vsel %vm295_vm1, %v296_v1, 0  ;;  %v590_v5 = vld [vmem:[#allocation2 + $0x24] sm:$0xf]  ;;  %v564_v6 = vor.u32 %v592_v4, %v563_v3  ;;  %v565_v7 = vld [vmem:[#allocation2 + $0x30] sm:$0x30] }
  0x19   : > { %v571_v8 = vld [vmem:[#allocation2 + $0x28] sm:$0xf]  ;;  %v593_v9 = vld [vmem:[#allocation2 + $0x34] sm:$0x30]  ;;  %v568_v10 = vor.u32 %v590_v5, %v565_v7  ;;  %v591_v12 = vld [vmem:[#allocation2 + $0x2c] sm:$0xf] }
  0x1a   : > { %s542_s9 = sshll.u32 %s841_s8, 2  ;;  %v572_v11 = vor.u32 %v593_v9, %v571_v8  ;;  %v573_v13 = vld [vmem:[#allocation2 + $0x38] sm:$0x30]  ;;  %v547_v14 = vld [vmem:[#allocation2] sm:$0xf]  ;;  %v299_v15 = vand.u32 %v564_v6, %v297_v2  ;;  %v755_v50 = vmov 0  }
  0x1b   : > { %v576_v16 = vor.u32 %v591_v12, %v573_v13  ;;  %v588_v17 = vld [vmem:[#allocation2 + $0xc] sm:$0xf0]  ;;  %v586_v18 = vld [vmem:[#allocation2 + $0x4] sm:$0xf]  ;;  %v549_v19 = vld [vmem:[#allocation2 + $0x10] sm:$0xf0]  ;;  %v302_v20 = vand.u32 %v568_v10, %v297_v2  ;;  %s235_s12 = scalar_lea.vmem %s889_s1, %s542_s9  ;;  %649 = vset.pattern.permute.xlu1 %v755_v50  ;;  %650 = vset.pattern.permute.xlu0 %v755_v50 }
  0x1c   : > { %v305_v21 = vand.u32 %v572_v11, %v297_v2  ;;  %v555_v22 = vld [vmem:[#allocation2 + $0x8] sm:$0xf]  ;;  %v589_v23 = vld [vmem:[#allocation2 + $0x14] sm:$0xf0]  ;;  %v587_v24 = vld [vmem:[#allocation2 + $0xc] sm:$0xf]  ;;  %316 = vmatpush.bf16.msra.mxu0 %v299_v15  ;;  %v548_v26 = vor.u32 %v588_v17, %v547_v14  ;;  %v552_v28 = vor.u32 %v586_v18, %v549_v19 }
  0x1d   : > { %v308_v25 = vand.u32 %v576_v16, %v297_v2  ;;  %v557_v27 = vld [vmem:[#allocation2 + $0x18] sm:$0xf0]  ;;  %329 = vmatpush.bf16.msra.mxu1 %v302_v20  ;;  %v556_v29 = vor.u32 %v589_v23, %v555_v22  ;;  %v245_v31 = vld [vmem:[%s235_s12] sm:$0xf]  ;;  %s543_s13 = sshll.u32 %s841_s8, 3  ;;  %s229_s29 = sand.u32 1, %s741_s16  }
  0x1e   : > { %342 = vmatpush.bf16.msra.mxu2 %v305_v21  ;;  %v560_v30 = vor.u32 %v587_v24, %v557_v27  ;;  %s239_s22 = scalar_lea.vmem %s890_s2, %s543_s13  ;;  %s243_s28 = scalar_lea.vmem %s891_s3, %s543_s13 }
  0x1f   : > { %355 = vmatpush.bf16.msra.mxu3 %v308_v25  ;;  %v392_v1 = vld [vmem:[%s239_s22] sm:$0xff]  ;;  %s541_s30 = sshll.u32 %s229_s29, 5  ;;  %s594_s5 = sshll.u32 %s802_s19, 5 }
  0x20   : > { %317 = vmatpush.bf16.msra.mxu0 %v548_v26  ;;  %v394_v5 = vld [vmem:[%s243_s28] sm:$0xff]  ;;  %s435_s8 = scalar_lea.hbm %s892_s4, %s594_s5  ;;  %s231_s9 = scalar_lea.vmem [#allocation5], %s541_s30 }
  0x21   : > { %330 = vmatpush.bf16.msra.mxu1 %v552_v28  ;;  %s437_s10 = sshll.u32 %s231_s9, 4  ;;  %s439_s19 = sshll.u32 %s435_s8, 4  ;;  %s438_s10 = int_to_ptr.vmem [resolvable:$true] %s437_s10  ;;  %s440_s19 = int_to_ptr.hbm [resolvable:$true] %s439_s19 }
  0x22   : > { %343 = vmatpush.bf16.msra.mxu2 %v556_v29  ;;  %s424_s11 = scalar_lea.sflag [#allocation4], %s229_s29  ;;  %s697_s12 = sshra.s32 %s440_s19, 4  ;;  %s698_s12 = int_to_ptr.hbm [resolvable:$true] %s697_s12 }
  0x23   : > { %356 = vmatpush.bf16.msra.mxu3 %v560_v30  ;;  %577 = vmatmul.msk.bf16.vlgmr.msra.gmra.mxu0 %vm290_vm2, %v245_v31  ;;  %s699_s13 = scalar_lea.hbm %s698_s12, 32  ;;  %s703_s22 = scalar_lea.hbm %s892_s4, 64 }
  0x24   : > { %578 = vmatmul.msk.bf16.vlgmr.msra.gmra.mxu1 %vm290_vm2, %v245_v31  ;;  %p700_p0 = scmp.ne.s32.totalorder %s698_s12, %s699_s13  ;;  %p704_p3 = scmp.lt.s32.totalorder %s698_s12, %s892_s4 }
  0x25   : > { %579 = vmatmul.msk.bf16.vlgmr.msra.gmra.mxu2 %vm290_vm2, %v245_v31  ;;  %p705_p4 = scmp.lt.s32.totalorder %s703_s22, %s699_s13 }
  0x26   : > { %580 = vmatmul.msk.bf16.vlgmr.msra.gmra.mxu3 %vm290_vm2, %v245_v31  ;;  %p701_p1 = pnand %p700_p0, %p819_p5 }
  0x27   : > { %p706_p7 = por %p705_p4, %p704_p3 }
  0x28   : > { %p702_p2 = pneg %p701_p1 }
  0x2a   : > { %p707_p8 = pnand %p706_p7, %p702_p2 }
  0xa0   : > { %v319_v32 = vpop.f32.mrf.mxu0 }
  0xa1   : > { %v332_v33 = vpop.f32.mrf.mxu1  ;;  %v368_v35 = vmul.f32 %v319_v32, %v319_v32 }
  0xa2   : > { %v362_v34 = vadd.f32 %v332_v33, %v319_v32  ;;  %v369_v36 = vmul.f32 %v332_v33, %v332_v33 }
  0xa4   : > { %v372_v44 = vadd.f32 %v369_v36, %v368_v35 }
  0xa8   : > { %v345_v37 = vpop.f32.mrf.mxu2  ;;  %v321_v39 = vpop.f32.mrf.mxu0 }
  0xa9   : > { %v358_v38 = vpop.f32.mrf.mxu3  ;;  %v363_v40 = vadd.f32 %v362_v34, %v345_v37  ;;  %v334_v41 = vpop.f32.mrf.mxu1  ;;  %v370_v42 = vmul.f32 %v345_v37, %v345_v37 }
  0xaa   : > { %v371_v45 = vmul.f32 %v358_v38, %v358_v38 }
  0xab   : > { %v364_v43 = vadd.f32 %v363_v40, %v358_v38  ;;  %v373_v46 = vadd.f32 %v372_v44, %v370_v42 }
  0xad   : > { %365 = vadd.xlane.f32.xlu0 %v364_v43  ;;  %v374_v49 = vadd.f32 %v373_v46, %v371_v45 }
  0xb0   : > { %v347_v47 = vpop.f32.mrf.mxu2 }
  0xb1   : > { %v360_v48 = vpop.f32.mrf.mxu3 }
  0xb5   : > { %375 = vadd.xlane.f32.xlu0 %v374_v49 }
 0x120   : > { %v366_v51 = vpop.xlane.xlu0 %365 }
 0x121   : > { %v367_v52 = vmul.f32 0.001953125, %v366_v51 }
 0x123   : > { %v378_v54 = vmul.f32 %v367_v52, %v367_v52 }
 0x128   : > { %v376_v53 = vpop.xlane.xlu0 %375 }
 0x129   : > { %v377_v55 = vmul.f32 0.001953125, %v376_v53 }
 0x12b   : > { %v379_v56 = vsub.f32 %v377_v55, %v378_v54 }
 0x12d   : > { %v380_v57 = vmax.f32 %v379_v56, 0.0 }
 0x12f   : > { %v381_v58 = vadd.f32 1e-05, %v380_v57 }
 0x131   : > { %651 = vrsqrt.f32 %v381_v58  ;;  %vm388_vm4 = vweird.f32 %v381_v58 }
 0x137   : > { %v652_v59 = vpop.eup %651 }
 0x138   : > { %v383_v60 = vmul.f32 %v652_v59, %v381_v58  ;;  %vm389_vm3 = vweird.f32 %v652_v59 }
 0x139   : > { %vm390_vm5 = vmor %vm388_vm4, %vm389_vm3 }
 0x13a   : > { %v384_v61 = vmul.f32 %v652_v59, %v383_v60 }
 0x13c   : > { %v385_v62 = vmul.f32 0.5, %v384_v61 }
 0x13e   : > { %v386_v63 = vsub.f32 1.5, %v385_v62 }
 0x140   : > { %v387_v0 = vmul.f32 %v652_v59, %v386_v63 }
 0x142   : > { %v391_v2 = vsel %vm390_vm5, %v652_v59, %v387_v0 }
 0x143   : > { %v393_v3 = vmul.f32 %v392_v1, %v391_v2 }
 0x145   : > { %399 = vperm.xlu1 %649, %v393_v3   ;;  %v395_v4 = vmul.f32 %v393_v3, %v367_v52 }
 0x147   : > { %v396_v6 = vsub.f32 %v394_v5, %v395_v4 }
 0x14d   : > { %408 = vperm.xlu1 %649, %v396_v6  }
 0x1b7   : > { %v400_v7 = vpop.permute.xlu1 %399 }
 0x1b8   : > { %v402_v8 = vmul.f32 %v400_v7, %v319_v32  ;;  %v403_v9 = vmul.f32 %v400_v7, %v332_v33  ;;  %v404_v10 = vmul.f32 %v400_v7, %v345_v37  ;;  %v405_v11 = vmul.f32 %v400_v7, %v358_v38 }
 0x1bf   : > { %v409_v12 = vpop.permute.xlu1 %408 }
 0x1c0   : > { %v411_v13 = vadd.f32 %v409_v12, %v402_v8  ;;  %v412_v14 = vadd.f32 %v409_v12, %v403_v9  ;;  %v413_v15 = vadd.f32 %v409_v12, %v404_v10  ;;  %v414_v16 = vadd.f32 %v409_v12, %v405_v11 }
 0x1c2   : > { %v415_v17 = vmax.f32 %v411_v13, 0.0  ;;  %v416_v18 = vmax.f32 %v412_v14, 0.0  ;;  %v417_v19 = vmax.f32 %v413_v15, 0.0  ;;  %v418_v20 = vmax.f32 %v414_v16, 0.0 }
 0x1c4   : > { %419 = vst [vmem:[%s231_s9] sm:$0xff] %v415_v17 }
 0x1c5   : > { %420 = vst [vmem:[%s231_s9 + $0x8] sm:$0xff] %v416_v18 }
 0x1c6   : > { %421 = vst [vmem:[%s231_s9 + $0x10] sm:$0xff] %v417_v19 }
 0x1c7   : > { %422 = vst [vmem:[%s231_s9 + $0x18] sm:$0xff] %v418_v20 }
 0x1c8   : > { %710 = shalt.err (!%p707_p8)
}
 0x1c9   : > { %599 = dma.vmem_to_hbm [thread:$0]  (%p819_p5), %s438_s10, 512, %s440_s19, %s424_s11  }
 0x1ca PF: > { %p611_p9 = scmp.ge.s32.totalorder %s749_s18, 2  ;;  %s451_s28 = sand.u32 1, %s737_s15  }
 0x1cb   : > { %s452_s29 = scalar_lea.sflag [#allocation4], %s451_s28 }
 0x1cc   : > { %p606_p10 = pnand %p611_p9, %p823_p6 }
 0x1ce   : > { %p607_p11 = pneg %p606_p10 }
 0x1d0   : > { %732 = dma.done.wait (%p607_p11), %s452_s29, 512  }
 0x1d1   : > { %734 = vsyncadd (%p607_p11), %s452_s29, 4294966784  ;;  %p15_p12 = scmp.ge.s32.totalorder %s806_s21, 4   ;;  %s895_s15 = smov %s741_s16 }
 0x1d2   : > { %s896_s16 = smov %s745_s17  ;;  %s897_s17 = smov %s817_s24 }
 0x1d3   : > { %s898_s18 = smov %s806_s21  ;;  %17 = sbr.rel (!%p15_p12) target bundleno = 4 (0x4), region = 82 }
 0x1d8   :  { %458 = vsyncpa [#allocation3], 1 }
 0x1d9   :  { %460 = vsyncpa [#allocation3 + $0x1], 1 }
 0x1da   :  { %461 = vsyncpa [#allocation4], 1 }
 0x1db   :  { %463 = vsyncpa [#allocation4 + $0x1], 1 }

</bundles_post_ra>
